<compile_context>
chip_gen: v6e
topology: v6e:2x2x1
jax: 0.10.0
libtpu: 0.0.40
codegen_flags: <defaults>
</compile_context>

<pallas_src>
import functools

import jax
import jax.numpy as jnp
from jax.experimental import pallas as pl
from jax.experimental.pallas import tpu as pltpu

_SMOOTH = 1e-5
_LANES = 128
_SUBLANES = 8
_MAX_TILE_ROWS = 1024   # 512 KiB per f32 input tile -> ~85-86% of HBM roofline
_MAX_CHUNKS = 2         # leading "parallel" grid axis -> both TensorCores on v7x


def _pick_tile_rows(rows):
    """Largest tile height <= _MAX_TILE_ROWS that is a multiple of 8 and divides
    `rows` exactly, so the kernel never reads a partial (out-of-bounds) block."""
    if rows <= _MAX_TILE_ROWS:
        return rows
    for t in range(_MAX_TILE_ROWS, _SUBLANES - 1, -_SUBLANES):
        if rows % t == 0:
            return t
    return _SUBLANES  # unreachable: rows is always a multiple of 8


def _dice_ce_kernel(x_ref, y_ref, out_ref, acc_ref, *,
                    tile_rows, steps_per_chunk, n_full_rows, n_rem, needs_mask):
    """Accumulate per-lane partial sums of (logf*lab, logf, lab, log1p(exp(-logf))).

    acc_ref : VMEM f32 (4, 8, 128) vector accumulators (reduced only in the epilogue:
              keeps the hot loop on the VPU and improves summation accuracy).
    out_ref : (1, 4, 8, 128) per-chunk partials, written once on the chunk's last step.
    """
    c = pl.program_id(0)
    s = pl.program_id(1)

    @pl.when(s == 0)
    def _init():
        acc_ref[...] = jnp.zeros_like(acc_ref)

    x = x_ref[...].astype(jnp.float32)
    y = y_ref[...].astype(jnp.float32)

    # logf = sigmoid(x) lies in (0, 1), so BCEWithLogits(logf, y) simplifies:
    #   max(logf,0) - logf*y + log1p(exp(-|logf|)) = logf - logf*y + log1p(exp(-logf))
    logf = jax.nn.sigmoid(x)
    sp = jnp.log1p(jnp.exp(-logf))
    inter = logf * y

    if needs_mask:
        # Ragged tail and/or overshooting (clamped) grid steps: zero out every
        # contribution past flat element n-1.  Pure VPU work, hidden under the
        # HBM-bound pipeline; statically skipped when the grid covers exactly n.
        block = c * steps_per_chunk + s
        grow = block * tile_rows + jax.lax.broadcasted_iota(
            jnp.int32, (tile_rows, _LANES), 0)
        valid = grow < n_full_rows
        if n_rem:
            lane = jax.lax.broadcasted_iota(jnp.int32, (tile_rows, _LANES), 1)
            valid = valid | ((grow == n_full_rows) & (lane < n_rem))
        zero = jnp.float32(0.0)
        inter = jnp.where(valid, inter, zero)
        logf = jnp.where(valid, logf, zero)
        y = jnp.where(valid, y, zero)
        sp = jnp.where(valid, sp, zero)

    def fold(t):
        # (tile_rows, 128) -> (8, 128): reduce along the leading sublane-group
        # axis; plain vector adds, no per-step cross-lane XLU reduction.
        return jnp.sum(t.reshape(tile_rows // _SUBLANES, _SUBLANES, _LANES), axis=0)

    acc_ref[0] += fold(inter)
    acc_ref[1] += fold(logf)
    acc_ref[2] += fold(y)
    acc_ref[3] += fold(sp)

    @pl.when(s == pl.num_programs(1) - 1)
    def _finalize():
        out_ref[0] = acc_ref[...]


@jax.jit
def dice_ce_loss(logits, labels):
    """Dice + BCE(sigmoid(logits)) loss matching the PyTorch DiceCELoss module.

    Accepts any shapes (flattened inside).  Labels may be f32/bf16/f16/int8/uint8/bool
    and are streamed to the kernel in their native width."""
    xf = jnp.ravel(logits)
    if not any(xf.dtype == d for d in (jnp.float32, jnp.bfloat16, jnp.float16)):
        xf = xf.astype(jnp.float32)
    yf = jnp.ravel(labels)
    if yf.dtype == jnp.bool_:
        yf = yf.astype(jnp.int8)
    elif not any(yf.dtype == d for d in
                 (jnp.float32, jnp.bfloat16, jnp.float16, jnp.int8, jnp.uint8)):
        yf = yf.astype(jnp.float32)

    n = xf.shape[0]
    # Pad only when the flat size is not a multiple of 8*128.  In the common NCHW
    # case (n % 1024 == 0) there is NO pad: ravel+reshape is a zero-copy relayout.
    pad = (-n) % (_SUBLANES * _LANES)
    if pad:
        xf = jnp.pad(xf, (0, pad))
        yf = jnp.pad(yf, (0, pad))
    rows = (n + pad) // _LANES

    tile_rows = _pick_tile_rows(rows)
    nblocks = rows // tile_rows
    nchunks = min(_MAX_CHUNKS, nblocks)
    spc = -(-nblocks // nchunks)                      # steps per chunk
    coverage = nchunks * spc * tile_rows * _LANES     # logical elements visited
    needs_mask = coverage != n                        # tail padding and/or overshoot

    x2 = xf.reshape(rows, _LANES)
    y2 = yf.reshape(rows, _LANES)

    def in_map(c, s):
        b = c * spc + s
        if nchunks * spc > nblocks:   # grid overshoots by <nchunks blocks: clamp;
            b = jnp.minimum(b, nblocks - 1)  # the extra visits are masked in-kernel
        return (b, 0)

    kernel = functools.partial(
        _dice_ce_kernel,
        tile_rows=tile_rows, steps_per_chunk=spc,
        n_full_rows=n // _LANES, n_rem=n % _LANES, needs_mask=needs_mask)

    partials = pl.pallas_call(
        kernel,
        out_shape=jax.ShapeDtypeStruct((nchunks, 4, _SUBLANES, _LANES), jnp.float32),
        grid_spec=pltpu.PrefetchScalarGridSpec(
            num_scalar_prefetch=0,
            grid=(nchunks, spc),
            in_specs=[pl.BlockSpec((tile_rows, _LANES), in_map),
                      pl.BlockSpec((tile_rows, _LANES), in_map)],
            out_specs=pl.BlockSpec((1, 4, _SUBLANES, _LANES),
                                   lambda c, s: (c, 0, 0, 0)),
            scratch_shapes=[pltpu.VMEM((4, _SUBLANES, _LANES), jnp.float32)],
        ),
        compiler_params=pltpu.CompilerParams(
            dimension_semantics=("parallel", "arbitrary")),
    )(x2, y2)

    # Tiny epilogue: combine the per-chunk vector partials and form the scalar loss.
    sums = jnp.sum(partials, axis=(0, 2, 3))
    s_inter, s_log, s_lab, s_sp = sums[0], sums[1], sums[2], sums[3]
    bce = (s_log - s_inter + s_sp) * jnp.float32(1.0 / n)
    dice = 1.0 - (2.0 * s_inter + _SMOOTH) / (s_log + s_lab + _SMOOTH)
    return bce + dice


def _reference(logits, labels):
    logf = jax.nn.sigmoid(jnp.ravel(logits).astype(jnp.float32))
    labf = jnp.ravel(labels).astype(jnp.float32)
    bce = jnp.mean(jnp.maximum(logf, 0.0) - logf * labf
                   + jnp.log1p(jnp.exp(-jnp.abs(logf))))
    inter = jnp.sum(logf * labf)
    dice = 1.0 - (2.0 * inter + _SMOOTH) / (jnp.sum(logf) + jnp.sum(labf) + _SMOOTH)
    return bce + dice


def _check(got, want, tol):
    assert jnp.allclose(got, want, atol=tol, rtol=tol), (got, want)


if __name__ == "__main__":
    key = jax.random.PRNGKey(0)
    k1, k2, k3, k4 = jax.random.split(key, 4)

    # Primary NCHW case (matches the PyTorch module's typical segmentation input).
    logits = jax.random.normal(k1, (2, 4, 16, 16), dtype=jnp.float32)
    labels = (jax.random.uniform(k2, (2, 4, 16, 16)) > 0.5).astype(jnp.float32)
    loss = dice_ce_loss(logits, labels)
    jax.block_until_ready(loss)
    ref = _reference(logits, labels)
    _check(loss, ref, 1e-5)

    # Narrow-dtype labels streamed directly (no wrapper-side f32 cast copy).
    _check(dice_ce_loss(logits, labels.astype(jnp.bfloat16)), ref, 1e-5)

    # Ragged flat size -> in-kernel iota tail mask path.
    lo = jax.random.normal(k3, (3, 5, 7, 11), dtype=jnp.float32)
    la = (jax.random.uniform(k4, (3, 5, 7, 11)) > 0.5).astype(jnp.float32)
    _check(dice_ce_loss(lo, la), _reference(lo, la), 1e-5)

    # Multi-block, two parallel chunks, odd block count (clamped + masked overshoot).
    lb = jax.random.normal(k1, (2, 4, 96, 512), dtype=jnp.float32)
    lbl = (jax.random.uniform(k2, (2, 4, 96, 512)) > 0.5).astype(jnp.float32)
    _check(dice_ce_loss(lb, lbl), _reference(lb, lbl), 1e-4)

    print("KERNEL_OK")
</pallas_src>

<mosaic_0001>
module attributes {stable_mosaic.version = 11 : i64} {
  func.func @_dice_ce_kernel(%arg0: i32, %arg1: i32, %arg2: memref<16x128xf32, #tpu.memory_space<vmem>>, %arg3: memref<16x128xf32, #tpu.memory_space<vmem>>, %arg4: memref<1x4x8x128xf32, #tpu.memory_space<vmem>>, %arg5: memref<4x8x128xf32, #tpu.memory_space<vmem>>) attributes {dimension_semantics = [#tpu.dimension_semantics<parallel>, #tpu.dimension_semantics<arbitrary>], iteration_bounds = array<i64: 1, 1>, scalar_prefetch = 0 : i64, scratch_operands = 1 : i64, tpu.core_type = #tpu.core_type<tc>, window_params = [{transform_indices = @transform_0, window_bounds = array<i64: 16, 128>}, {transform_indices = @transform_1, window_bounds = array<i64: 16, 128>}, {transform_indices = @transform_2, window_bounds = array<i64: 1, 4, 8, 128>}]} {
    %c0_i32 = arith.constant 0 : i32
    %0 = arith.cmpi eq, %arg1, %c0_i32 : i32
    %1 = arith.extui %0 : i1 to i32
    %c0_i32_0 = arith.constant 0 : i32
    %2 = arith.cmpi ne, %1, %c0_i32_0 : i32
    scf.if %2 {
      %cst_32 = arith.constant 0.000000e+00 : f32
      %50 = vector.broadcast %cst_32 : f32 to vector<4x8x128xf32>
      %c0_33 = arith.constant 0 : index
      %c0_34 = arith.constant 0 : index
      %c0_35 = arith.constant 0 : index
      %51 = vector.load %arg5[%c0_33, %c0_34, %c0_35] : memref<4x8x128xf32, #tpu.memory_space<vmem>>, vector<4x8x128xf32>
      tpu.vector_store %arg5[%c0_33, %c0_34, %c0_35], %50 {strides = array<i32>} : memref<4x8x128xf32, #tpu.memory_space<vmem>>, vector<4x8x128xf32>,
    } else {
    }
    %c0 = arith.constant 0 : index
    %c0_1 = arith.constant 0 : index
    %3 = vector.load %arg2[%c0, %c0_1] : memref<16x128xf32, #tpu.memory_space<vmem>>, vector<16x128xf32>
    %c0_2 = arith.constant 0 : index
    %c0_3 = arith.constant 0 : index
    %4 = vector.load %arg3[%c0_2, %c0_3] : memref<16x128xf32, #tpu.memory_space<vmem>>, vector<16x128xf32>
    %5 = arith.negf %3 : vector<16x128xf32>
    %6 = math.exp %5 : vector<16x128xf32>
    %cst = arith.constant 1.000000e+00 : f32
    %7 = vector.broadcast %cst : f32 to vector<16x128xf32>
    %8 = arith.addf %7, %6 : vector<16x128xf32>
    %9 = arith.divf %7, %8 : vector<16x128xf32>
    %cst_4 = arith.constant 0.000000e+00 : f32
    %10 = vector.broadcast %cst_4 : f32 to vector<16x128xf32>
    %11 = arith.subf %10, %9 : vector<16x128xf32>
    %12 = math.exp %11 : vector<16x128xf32>
    %13 = math.log1p %12 : vector<16x128xf32>
    %14 = arith.mulf %9, %4 : vector<16x128xf32>
    %c0_5 = arith.constant 0 : index
    %c0_6 = arith.constant 0 : index
    %c0_7 = arith.constant 0 : index
    %15 = vector.load %arg5[%c0_5, %c0_6, %c0_7] : memref<4x8x128xf32, #tpu.memory_space<vmem>>, vector<1x8x128xf32>
    %16 = vector.shape_cast %15 : vector<1x8x128xf32> to vector<8x128xf32>
    %17 = vector.shape_cast %14 : vector<16x128xf32> to vector<2x8x128xf32>
    %cst_8 = arith.constant dense<0.000000e+00> : vector<8x128xf32>
    %18 = vector.multi_reduction <add>, %17, %cst_8 [0] : vector<2x8x128xf32> to vector<8x128xf32>
    %19 = arith.addf %16, %18 : vector<8x128xf32>
    %c0_9 = arith.constant 0 : index
    %c0_10 = arith.constant 0 : index
    %c0_11 = arith.constant 0 : index
    %20 = vector.load %arg5[%c0_9, %c0_10, %c0_11] : memref<4x8x128xf32, #tpu.memory_space<vmem>>, vector<1x8x128xf32>
    %21 = vector.shape_cast %20 : vector<1x8x128xf32> to vector<8x128xf32>
    %22 = vector.shape_cast %19 : vector<8x128xf32> to vector<1x8x128xf32>
    tpu.vector_store %arg5[%c0_9, %c0_10, %c0_11], %22 {strides = array<i32>} : memref<4x8x128xf32, #tpu.memory_space<vmem>>, vector<1x8x128xf32>,
    %c1 = arith.constant 1 : index
    %c0_12 = arith.constant 0 : index
    %c0_13 = arith.constant 0 : index
    %23 = vector.load %arg5[%c1, %c0_12, %c0_13] : memref<4x8x128xf32, #tpu.memory_space<vmem>>, vector<1x8x128xf32>
    %24 = vector.shape_cast %23 : vector<1x8x128xf32> to vector<8x128xf32>
    %25 = vector.shape_cast %9 : vector<16x128xf32> to vector<2x8x128xf32>
    %cst_14 = arith.constant dense<0.000000e+00> : vector<8x128xf32>
    %26 = vector.multi_reduction <add>, %25, %cst_14 [0] : vector<2x8x128xf32> to vector<8x128xf32>
    %27 = arith.addf %24, %26 : vector<8x128xf32>
    %c1_15 = arith.constant 1 : index
    %c0_16 = arith.constant 0 : index
    %c0_17 = arith.constant 0 : index
    %28 = vector.load %arg5[%c1_15, %c0_16, %c0_17] : memref<4x8x128xf32, #tpu.memory_space<vmem>>, vector<1x8x128xf32>
    %29 = vector.shape_cast %28 : vector<1x8x128xf32> to vector<8x128xf32>
    %30 = vector.shape_cast %27 : vector<8x128xf32> to vector<1x8x128xf32>
    tpu.vector_store %arg5[%c1_15, %c0_16, %c0_17], %30 {strides = array<i32>} : memref<4x8x128xf32, #tpu.memory_space<vmem>>, vector<1x8x128xf32>,
    %c2 = arith.constant 2 : index
    %c0_18 = arith.constant 0 : index
    %c0_19 = arith.constant 0 : index
    %31 = vector.load %arg5[%c2, %c0_18, %c0_19] : memref<4x8x128xf32, #tpu.memory_space<vmem>>, vector<1x8x128xf32>
    %32 = vector.shape_cast %31 : vector<1x8x128xf32> to vector<8x128xf32>
    %33 = vector.shape_cast %4 : vector<16x128xf32> to vector<2x8x128xf32>
    %cst_20 = arith.constant dense<0.000000e+00> : vector<8x128xf32>
    %34 = vector.multi_reduction <add>, %33, %cst_20 [0] : vector<2x8x128xf32> to vector<8x128xf32>
    %35 = arith.addf %32, %34 : vector<8x128xf32>
    %c2_21 = arith.constant 2 : index
    %c0_22 = arith.constant 0 : index
    %c0_23 = arith.constant 0 : index
    %36 = vector.load %arg5[%c2_21, %c0_22, %c0_23] : memref<4x8x128xf32, #tpu.memory_space<vmem>>, vector<1x8x128xf32>
    %37 = vector.shape_cast %36 : vector<1x8x128xf32> to vector<8x128xf32>
    %38 = vector.shape_cast %35 : vector<8x128xf32> to vector<1x8x128xf32>
    tpu.vector_store %arg5[%c2_21, %c0_22, %c0_23], %38 {strides = array<i32>} : memref<4x8x128xf32, #tpu.memory_space<vmem>>, vector<1x8x128xf32>,
    %c3 = arith.constant 3 : index
    %c0_24 = arith.constant 0 : index
    %c0_25 = arith.constant 0 : index
    %39 = vector.load %arg5[%c3, %c0_24, %c0_25] : memref<4x8x128xf32, #tpu.memory_space<vmem>>, vector<1x8x128xf32>
    %40 = vector.shape_cast %39 : vector<1x8x128xf32> to vector<8x128xf32>
    %41 = vector.shape_cast %13 : vector<16x128xf32> to vector<2x8x128xf32>
    %cst_26 = arith.constant dense<0.000000e+00> : vector<8x128xf32>
    %42 = vector.multi_reduction <add>, %41, %cst_26 [0] : vector<2x8x128xf32> to vector<8x128xf32>
    %43 = arith.addf %40, %42 : vector<8x128xf32>
    %c3_27 = arith.constant 3 : index
    %c0_28 = arith.constant 0 : index
    %c0_29 = arith.constant 0 : index
    %44 = vector.load %arg5[%c3_27, %c0_28, %c0_29] : memref<4x8x128xf32, #tpu.memory_space<vmem>>, vector<1x8x128xf32>
    %45 = vector.shape_cast %44 : vector<1x8x128xf32> to vector<8x128xf32>
    %46 = vector.shape_cast %43 : vector<8x128xf32> to vector<1x8x128xf32>
    tpu.vector_store %arg5[%c3_27, %c0_28, %c0_29], %46 {strides = array<i32>} : memref<4x8x128xf32, #tpu.memory_space<vmem>>, vector<1x8x128xf32>,
    %c0_i32_30 = arith.constant 0 : i32
    %47 = arith.cmpi eq, %arg1, %c0_i32_30 : i32
    %48 = arith.extui %47 : i1 to i32
    %c0_i32_31 = arith.constant 0 : i32
    %49 = arith.cmpi ne, %48, %c0_i32_31 : i32
    scf.if %49 {
      %c0_32 = arith.constant 0 : index
      %c0_33 = arith.constant 0 : index
      %c0_34 = arith.constant 0 : index
      %50 = vector.load %arg5[%c0_32, %c0_33, %c0_34] : memref<4x8x128xf32, #tpu.memory_space<vmem>>, vector<4x8x128xf32>
      %c0_35 = arith.constant 0 : index
      %c0_36 = arith.constant 0 : index
      %c0_37 = arith.constant 0 : index
      %c0_38 = arith.constant 0 : index
      %51 = vector.load %arg4[%c0_35, %c0_36, %c0_37, %c0_38] : memref<1x4x8x128xf32, #tpu.memory_space<vmem>>, vector<1x4x8x128xf32>
      %52 = vector.shape_cast %51 : vector<1x4x8x128xf32> to vector<4x8x128xf32>
      %53 = vector.shape_cast %50 : vector<4x8x128xf32> to vector<1x4x8x128xf32>
      tpu.vector_store %arg4[%c0_35, %c0_36, %c0_37, %c0_38], %53 {strides = array<i32>} : memref<1x4x8x128xf32, #tpu.memory_space<vmem>>, vector<1x4x8x128xf32>,
    } else {
    }
    return
  }
  func.func @transform_0(%arg0: i32, %arg1: i32) -> (i32, i32) {
    %c1_i32 = arith.constant 1 : i32
    %0 = arith.muli %arg0, %c1_i32 : i32
    %1 = arith.addi %0, %arg1 : i32
    %c0_i32 = arith.constant 0 : i32
    %c0_i32_0 = arith.constant 0 : i32
    return %1, %c0_i32 : i32, i32
  }
  func.func @transform_1(%arg0: i32, %arg1: i32) -> (i32, i32) {
    %c1_i32 = arith.constant 1 : i32
    %0 = arith.muli %arg0, %c1_i32 : i32
    %1 = arith.addi %0, %arg1 : i32
    %c0_i32 = arith.constant 0 : i32
    %c0_i32_0 = arith.constant 0 : i32
    return %1, %c0_i32 : i32, i32
  }
  func.func @transform_2(%arg0: i32, %arg1: i32) -> (i32, i32, i32, i32) {
    %c0_i32 = arith.constant 0 : i32
    %c0_i32_0 = arith.constant 0 : i32
    %c0_i32_1 = arith.constant 0 : i32
    %c0_i32_2 = arith.constant 0 : i32
    return %arg0, %c0_i32, %c0_i32_0, %c0_i32_1 : i32, i32, i32, i32
  }
}

</mosaic_0001>

<bundles_post_ra>
// kernel: dice_ce_loss.1
= control target key start
LH: loop header
LB: loop body
LE: loop exit
PB: predicated region body
PF: predicated region fallthrough
CT: control target
= control target key end

     0   :  { %s208_s0 = inlined_call_operand.vmem [shape: f32[16,128], index: 0, kind: input, shape index: {}]   ;;  %s209_s1 = inlined_call_operand.vmem [shape: f32[16,128], index: 1, kind: input, shape index: {}]   ;;  %s210_s2 = inlined_call_operand.vmem [shape: f32[1,4,8,128], index: 2, kind: output, shape index: {}]  }
   0x1   :  { %v63_v0 = vld [vmem:[%s208_s0] sm:$0xff]  ;;  %v64_v1 = vld [vmem:[%s208_s0 + $0x8] sm:$0xff] }
   0x2   :  { %v65_v2 = vld [vmem:[%s209_s1] sm:$0xff]  ;;  %v66_v3 = vld [vmem:[%s209_s1 + $0x8] sm:$0xff]  ;;  %v151_v4 = vmul.f32 -1.442695, %v63_v0  ;;  %v152_v5 = vmul.f32 -1.442695, %v64_v1 }
   0x3   :  { %v116_v6 = vadd.f32 %v66_v3, %v65_v2 }
   0x4   :  { %153 = vpow2.f32 %v151_v4 }
   0x5   :  { %155 = vpow2.f32 %v152_v5  ;;  %133 = vst [vmem:[%s210_s2 + $0x10] sm:$0xff] %v116_v6 }
  0x11   :  { %v154_v7 = vpop.eup %153 }
  0x12   :  { %v156_v8 = vpop.eup %155  ;;  %v73_v9 = vadd.f32 1.0, %v154_v7 }
  0x13   :  { %v74_v10 = vadd.f32 1.0, %v156_v8 }
  0x14   :  { %157 = vrcp.f32 %v73_v9 }
  0x15   :  { %159 = vrcp.f32 %v74_v10 }
  0x21   :  { %v158_v11 = vpop.eup %157 }
  0x22   :  { %v160_v12 = vpop.eup %159  ;;  %v103_v13 = vmul.f32 %v158_v11, %v65_v2  ;;  %v79_v14 = vsub.f32 0.0, %v158_v11 }
  0x23   :  { %v104_v15 = vmul.f32 %v160_v12, %v66_v3  ;;  %v111_v16 = vadd.f32 %v160_v12, %v158_v11  ;;  %v80_v17 = vsub.f32 0.0, %v160_v12 }
  0x24   :  { %v81_v18 = vmul.f32 1.442695, %v79_v14 }
  0x25   :  { %v106_v19 = vadd.f32 %v104_v15, %v103_v13  ;;  %132 = vst [vmem:[%s210_s2 + $0x8] sm:$0xff] %v111_v16  ;;  %v83_v20 = vmul.f32 1.442695, %v80_v17 }
  0x26   :  { %161 = vpow2.f32 %v81_v18 }
  0x27   :  { %131 = vst [vmem:[%s210_s2] sm:$0xff] %v106_v19  ;;  %163 = vpow2.f32 %v83_v20 }
  0x33   :  { %v162_v21 = vpop.eup %161 }
  0x34   :  { %v164_v22 = vpop.eup %163  ;;  %v85_v23 = vadd.f32 1.0, %v162_v21  ;;  %v88_v25 = vmul.f32 -0.5, %v162_v21  ;;  %v91_v28 = vand.u32 2147483647, %v162_v21 }
  0x35   :  { %v94_v24 = vadd.f32 1.0, %v164_v22  ;;  %v97_v26 = vmul.f32 -0.5, %v164_v22  ;;  %v100_v30 = vand.u32 2147483647, %v164_v22 }
  0x36   :  { %165 = vlog2.f32 %v85_v23  ;;  %v89_v27 = vadd.f32 1.0, %v88_v25  ;;  %vm92_vm0 = vcmp.lt.f32.partialorder %v91_v28, 0.0004427343 }
  0x37   :  { %167 = vlog2.f32 %v94_v24  ;;  %v98_v29 = vadd.f32 1.0, %v97_v26  ;;  %vm101_vm1 = vcmp.lt.f32.partialorder %v100_v30, 0.0004427343 }
  0x38   :  { %v90_v31 = vmul.f32 %v162_v21, %v89_v27 }
  0x39   :  { %v99_v33 = vmul.f32 %v164_v22, %v98_v29 }
  0x43   :  { %v166_v32 = vpop.eup %165 }
  0x44   :  { %v168_v34 = vpop.eup %167  ;;  %v87_v35 = vmul.f32 0.6931472, %v166_v32 }
  0x45   :  { %v96_v36 = vmul.f32 0.6931472, %v168_v34 }
  0x46   :  { %v93_v37 = vsel %vm92_vm0, %v90_v31, %v87_v35 }
  0x47   :  { %v102_v38 = vsel %vm101_vm1, %v99_v33, %v96_v36 }
  0x48   :  { %v121_v39 = vadd.f32 %v102_v38, %v93_v37 }
  0x4a   :  { %134 = vst [vmem:[%s210_s2 + $0x18] sm:$0xff] %v121_v39 }

</bundles_post_ra>
